<compile_context>
chip_gen: v5e
topology: v5e:2x2
jax: 0.10.0
libtpu: 0.0.40
codegen_flags: <defaults>
</compile_context>

<pallas_src>
import jax
import jax.numpy as jnp
from jax.experimental import pallas as pl
from jax.experimental.pallas import tpu as pltpu


def _round_up(x, m):
    return ((x + m - 1) // m) * m


def vae_encoder_kernel(x_ref, w1_ref, b1_ref, w2_ref, b2_ref,
                       wh_ref, bh_ref, eps_ref, out_ref):
    """One batch tile: fused MLP + fused [mu||log_var] head + reparameterization.

    out_ref layout (lane-dense): out[:, :ZP] = z = eps*std + mu, out[:, ZP:] = std,
    where ZP = latent dim padded to a multiple of 128 lanes.
    """
    zp = out_ref.shape[-1] // 2

    # net: Linear(D_in, 512) -> ReLU -> Linear(512, 256) -> ReLU
    # bf16 operands on the MXU, f32 accumulation.
    h1 = jnp.dot(x_ref[...].astype(jnp.bfloat16), w1_ref[...],
                 preferred_element_type=jnp.float32)
    h1 = jnp.maximum(h1 + b1_ref[...], 0.0)
    h2 = jnp.dot(h1.astype(jnp.bfloat16), w2_ref[...],
                 preferred_element_type=jnp.float32)
    h2 = jnp.maximum(h2 + b2_ref[...], 0.0)

    # fused heads: one matmul produces [mu || log_var] (each zp lanes wide)
    head = jnp.dot(h2.astype(jnp.bfloat16), wh_ref[...],
                   preferred_element_type=jnp.float32) + bh_ref[...]
    mu = head[:, :zp]
    log_var = head[:, zp:]

    # reparameterization
    std = jnp.exp(0.5 * log_var)
    out_ref[:, :zp] = eps_ref[...] * std + mu     # z
    out_ref[:, zp:] = std


def vae_encoder(x_nchw, params, eps):
    B = x_nchw.shape[0]
    x = x_nchw.reshape(B, -1).astype(jnp.float32)   # same as torch reshape(B, -1)
    d_in = x.shape[1]
    h2_dim = params["wmu"].shape[0]
    Z = params["bmu"].shape[-1]

    # --- pack + pad the two heads into one lane-dense weight/bias --------------------
    ZP = _round_up(max(Z, 1), 128)                 # latent dim padded to full lanes
    wh = jnp.zeros((h2_dim, 2 * ZP), jnp.float32)
    wh = wh.at[:, :Z].set(params["wmu"]).at[:, ZP:ZP + Z].set(params["wlv"])
    bh = jnp.zeros((1, 2 * ZP), jnp.float32)
    bh = bh.at[:, :Z].set(params["bmu"]).at[:, ZP:ZP + Z].set(params["blv"])

    # bf16 weights (halve the dominant HBM->VMEM weight traffic); biases stay f32
    w1 = params["w1"].astype(jnp.bfloat16)
    w2 = params["w2"].astype(jnp.bfloat16)
    wh = wh.astype(jnp.bfloat16)
    b1, b2 = params["b1"], params["b2"]

    # --- batch tiling: pad batch to a sublane multiple, tile at <=128 rows ------------
    TM = min(128, _round_up(B, 8))
    B_pad = _round_up(B, TM)
    num_tiles = B_pad // TM

    x_p = jnp.zeros((B_pad, d_in), jnp.float32).at[:B].set(x)
    eps_p = jnp.zeros((B_pad, ZP), jnp.float32).at[:B, :Z].set(eps)

    resident = lambda arr: pl.BlockSpec(arr.shape, lambda i: (0,) * arr.ndim)

    out = pl.pallas_call(
        vae_encoder_kernel,
        out_shape=jax.ShapeDtypeStruct((B_pad, 2 * ZP), jnp.float32),
        grid=(num_tiles,),
        in_specs=[
            pl.BlockSpec((TM, d_in), lambda i: (i, 0)),     # x: tiled along batch
            resident(w1), resident(b1),                     # weights: VMEM-resident
            resident(w2), resident(b2),
            resident(wh), resident(bh),
            pl.BlockSpec((TM, ZP), lambda i: (i, 0)),       # eps: tiled along batch
        ],
        out_specs=pl.BlockSpec((TM, 2 * ZP), lambda i: (i, 0)),
        compiler_params=pltpu.CompilerParams(
            dimension_semantics=("parallel",)),             # shards batch across v7x TCs
    )(x_p, w1, b1, w2, b2, wh, bh, eps_p)

    z = out[:B, :Z]
    std = out[:B, ZP:ZP + Z]
    # PyTorch forward returns (eps*std + mu, std, eps)
    return z, std, eps


def init_params(key, d_in, d_out):
    ks = jax.random.split(key, 8)

    def lin(kw, kb, fan_in, fan_out):
        scale = 1.0 / jnp.sqrt(jnp.float32(fan_in))
        w = jax.random.uniform(kw, (fan_in, fan_out), jnp.float32, -scale, scale)
        b = jax.random.uniform(kb, (1, fan_out), jnp.float32, -scale, scale)
        return w, b

    w1, b1 = lin(ks[0], ks[1], d_in, 512)
    w2, b2 = lin(ks[2], ks[3], 512, 256)
    wmu, bmu = lin(ks[4], ks[5], 256, d_out)
    wlv, blv = lin(ks[6], ks[7], 256, d_out)
    return dict(w1=w1, b1=b1, w2=w2, b2=b2,
                wmu=wmu, bmu=bmu, wlv=wlv, blv=blv)


if __name__ == "__main__":
    # Small MNIST-like config: args.input_size = (16, 16), args.output_size = 8
    B, C, H, W = 2, 1, 16, 16        # C=1 so C*H*W == input_size[0]*input_size[1]
    Z = 8
    D_IN = C * H * W

    key = jax.random.PRNGKey(0)
    k_x, k_eps, k_p = jax.random.split(key, 3)

    x = jax.random.normal(k_x, (B, C, H, W), jnp.float32)
    # TODO(synk): eps is drawn in the wrapper (equivalent of torch.randn_like) and passed
    # into the kernel rather than generated in-kernel with pltpu.prng_*.
    eps = jax.random.normal(k_eps, (B, Z), jnp.float32)
    params = init_params(k_p, D_IN, Z)

    z, std, eps_out = vae_encoder(x, params, eps)
    jax.block_until_ready((z, std, eps_out))

    # pure-JAX reference with the same bf16 weight quantization / f32 accumulation
    w1b = params["w1"].astype(jnp.bfloat16)
    w2b = params["w2"].astype(jnp.bfloat16)
    wmub = params["wmu"].astype(jnp.bfloat16)
    wlvb = params["wlv"].astype(jnp.bfloat16)
    xf = x.reshape(B, -1).astype(jnp.float32)
    h1 = jnp.maximum(jnp.dot(xf.astype(jnp.bfloat16), w1b,
                             preferred_element_type=jnp.float32) + params["b1"], 0.0)
    h2 = jnp.maximum(jnp.dot(h1.astype(jnp.bfloat16), w2b,
                             preferred_element_type=jnp.float32) + params["b2"], 0.0)
    mu_ref = jnp.dot(h2.astype(jnp.bfloat16), wmub,
                     preferred_element_type=jnp.float32) + params["bmu"]
    lv_ref = jnp.dot(h2.astype(jnp.bfloat16), wlvb,
                     preferred_element_type=jnp.float32) + params["blv"]
    std_ref = jnp.exp(0.5 * lv_ref)
    z_ref = eps * std_ref + mu_ref

    assert jnp.allclose(z, z_ref, atol=1e-2, rtol=1e-2), "z mismatch"
    assert jnp.allclose(std, std_ref, atol=1e-2, rtol=1e-2), "std mismatch"

    print("KERNEL_OK")
</pallas_src>

<mosaic_0001>
module attributes {stable_mosaic.version = 11 : i64} {
  func.func @vae_encoder_kernel(%arg0: i32, %arg1: memref<8x256xf32, #tpu.memory_space<vmem>>, %arg2: memref<256x512xbf16, #tpu.memory_space<vmem>>, %arg3: memref<1x512xf32, #tpu.memory_space<vmem>>, %arg4: memref<512x256xbf16, #tpu.memory_space<vmem>>, %arg5: memref<1x256xf32, #tpu.memory_space<vmem>>, %arg6: memref<256x256xbf16, #tpu.memory_space<vmem>>, %arg7: memref<1x256xf32, #tpu.memory_space<vmem>>, %arg8: memref<8x128xf32, #tpu.memory_space<vmem>>, %arg9: memref<8x256xf32, #tpu.memory_space<vmem>>) attributes {dimension_semantics = [#tpu.dimension_semantics<parallel>], iteration_bounds = array<i64: 1>, scalar_prefetch = 0 : i64, scratch_operands = 0 : i64, tpu.core_type = #tpu.core_type<tc>, window_params = [{transform_indices = @transform_0, window_bounds = array<i64: 8, 256>}, {pipeline_mode = #tpu.pipeline_mode<synchronous>, transform_indices = @transform_1, window_bounds = array<i64: 256, 512>}, {pipeline_mode = #tpu.pipeline_mode<synchronous>, transform_indices = @transform_2, window_bounds = array<i64: 1, 512>}, {pipeline_mode = #tpu.pipeline_mode<synchronous>, transform_indices = @transform_3, window_bounds = array<i64: 512, 256>}, {pipeline_mode = #tpu.pipeline_mode<synchronous>, transform_indices = @transform_4, window_bounds = array<i64: 1, 256>}, {pipeline_mode = #tpu.pipeline_mode<synchronous>, transform_indices = @transform_5, window_bounds = array<i64: 256, 256>}, {pipeline_mode = #tpu.pipeline_mode<synchronous>, transform_indices = @transform_6, window_bounds = array<i64: 1, 256>}, {transform_indices = @transform_7, window_bounds = array<i64: 8, 128>}, {transform_indices = @transform_8, window_bounds = array<i64: 8, 256>}]} {
    %c0 = arith.constant 0 : index
    %c0_0 = arith.constant 0 : index
    %0 = vector.load %arg1[%c0, %c0_0] : memref<8x256xf32, #tpu.memory_space<vmem>>, vector<8x256xf32>
    %1 = arith.truncf %0 : vector<8x256xf32> to vector<8x256xbf16>
    %c0_1 = arith.constant 0 : index
    %c0_2 = arith.constant 0 : index
    %2 = vector.load %arg2[%c0_1, %c0_2] : memref<256x512xbf16, #tpu.memory_space<vmem>>, vector<256x512xbf16>
    %cst = arith.constant dense<0.000000e+00> : vector<8x512xf32>
    %3 = tpu.matmul %1, %2, %cst {dimension_numbers = #tpu.dot_dimension_numbers<[1], [0], [0], [1], [0, 0, 1, 1], [], []>} : vector<8x256xbf16>, vector<256x512xbf16>, vector<8x512xf32> -> vector<8x512xf32>
    %c0_3 = arith.constant 0 : index
    %c0_4 = arith.constant 0 : index
    %4 = vector.load %arg3[%c0_3, %c0_4] : memref<1x512xf32, #tpu.memory_space<vmem>>, vector<1x512xf32>
    %5 = vector.broadcast %4 : vector<1x512xf32> to vector<8x512xf32>
    %6 = arith.addf %3, %5 : vector<8x512xf32>
    %cst_5 = arith.constant 0.000000e+00 : f32
    %7 = vector.broadcast %cst_5 : f32 to vector<8x512xf32>
    %8 = arith.maximumf %6, %7 : vector<8x512xf32>
    %9 = arith.truncf %8 : vector<8x512xf32> to vector<8x512xbf16>
    %c0_6 = arith.constant 0 : index
    %c0_7 = arith.constant 0 : index
    %10 = vector.load %arg4[%c0_6, %c0_7] : memref<512x256xbf16, #tpu.memory_space<vmem>>, vector<512x256xbf16>
    %cst_8 = arith.constant dense<0.000000e+00> : vector<8x256xf32>
    %11 = tpu.matmul %9, %10, %cst_8 {dimension_numbers = #tpu.dot_dimension_numbers<[1], [0], [0], [1], [0, 0, 1, 1], [], []>} : vector<8x512xbf16>, vector<512x256xbf16>, vector<8x256xf32> -> vector<8x256xf32>
    %c0_9 = arith.constant 0 : index
    %c0_10 = arith.constant 0 : index
    %12 = vector.load %arg5[%c0_9, %c0_10] : memref<1x256xf32, #tpu.memory_space<vmem>>, vector<1x256xf32>
    %13 = vector.broadcast %12 : vector<1x256xf32> to vector<8x256xf32>
    %14 = arith.addf %11, %13 : vector<8x256xf32>
    %cst_11 = arith.constant 0.000000e+00 : f32
    %15 = vector.broadcast %cst_11 : f32 to vector<8x256xf32>
    %16 = arith.maximumf %14, %15 : vector<8x256xf32>
    %17 = arith.truncf %16 : vector<8x256xf32> to vector<8x256xbf16>
    %c0_12 = arith.constant 0 : index
    %c0_13 = arith.constant 0 : index
    %18 = vector.load %arg6[%c0_12, %c0_13] : memref<256x256xbf16, #tpu.memory_space<vmem>>, vector<256x256xbf16>
    %cst_14 = arith.constant dense<0.000000e+00> : vector<8x256xf32>
    %19 = tpu.matmul %17, %18, %cst_14 {dimension_numbers = #tpu.dot_dimension_numbers<[1], [0], [0], [1], [0, 0, 1, 1], [], []>} : vector<8x256xbf16>, vector<256x256xbf16>, vector<8x256xf32> -> vector<8x256xf32>
    %c0_15 = arith.constant 0 : index
    %c0_16 = arith.constant 0 : index
    %20 = vector.load %arg7[%c0_15, %c0_16] : memref<1x256xf32, #tpu.memory_space<vmem>>, vector<1x256xf32>
    %21 = vector.broadcast %20 : vector<1x256xf32> to vector<8x256xf32>
    %22 = arith.addf %19, %21 : vector<8x256xf32>
    %23 = vector.extract_strided_slice %22 {offsets = [0, 0], sizes = [8, 128], strides = [1, 1]} : vector<8x256xf32> to vector<8x128xf32>
    %24 = vector.extract_strided_slice %22 {offsets = [0, 128], sizes = [8, 128], strides = [1, 1]} : vector<8x256xf32> to vector<8x128xf32>
    %cst_17 = arith.constant 5.000000e-01 : f32
    %25 = vector.broadcast %cst_17 : f32 to vector<8x128xf32>
    %26 = arith.mulf %25, %24 : vector<8x128xf32>
    %27 = math.exp %26 : vector<8x128xf32>
    %c0_18 = arith.constant 0 : index
    %c0_19 = arith.constant 0 : index
    %28 = vector.load %arg8[%c0_18, %c0_19] : memref<8x128xf32, #tpu.memory_space<vmem>>, vector<8x128xf32>
    %29 = arith.mulf %28, %27 : vector<8x128xf32>
    %30 = arith.addf %29, %23 : vector<8x128xf32>
    %c0_20 = arith.constant 0 : index
    %c0_21 = arith.constant 0 : index
    %31 = vector.load %arg9[%c0_20, %c0_21] : memref<8x256xf32, #tpu.memory_space<vmem>>, vector<8x128xf32>
    tpu.vector_store %arg9[%c0_20, %c0_21], %30 {strides = array<i32>} : memref<8x256xf32, #tpu.memory_space<vmem>>, vector<8x128xf32>,
    %c0_22 = arith.constant 0 : index
    %c128 = arith.constant 128 : index
    %32 = vector.load %arg9[%c0_22, %c128] : memref<8x256xf32, #tpu.memory_space<vmem>>, vector<8x128xf32>
    tpu.vector_store %arg9[%c0_22, %c128], %27 {strides = array<i32>} : memref<8x256xf32, #tpu.memory_space<vmem>>, vector<8x128xf32>,
    return
  }
  func.func @transform_0(%arg0: i32) -> (i32, i32) {
    %c0_i32 = arith.constant 0 : i32
    %c0_i32_0 = arith.constant 0 : i32
    return %arg0, %c0_i32 : i32, i32
  }
  func.func @transform_1(%arg0: i32) -> (i32, i32) {
    %c0_i32 = arith.constant 0 : i32
    %c0_i32_0 = arith.constant 0 : i32
    %c0_i32_1 = arith.constant 0 : i32
    return %c0_i32, %c0_i32_0 : i32, i32
  }
  func.func @transform_2(%arg0: i32) -> (i32, i32) {
    %c0_i32 = arith.constant 0 : i32
    %c0_i32_0 = arith.constant 0 : i32
    %c0_i32_1 = arith.constant 0 : i32
    return %c0_i32, %c0_i32_0 : i32, i32
  }
  func.func @transform_3(%arg0: i32) -> (i32, i32) {
    %c0_i32 = arith.constant 0 : i32
    %c0_i32_0 = arith.constant 0 : i32
    %c0_i32_1 = arith.constant 0 : i32
    return %c0_i32, %c0_i32_0 : i32, i32
  }
  func.func @transform_4(%arg0: i32) -> (i32, i32) {
    %c0_i32 = arith.constant 0 : i32
    %c0_i32_0 = arith.constant 0 : i32
    %c0_i32_1 = arith.constant 0 : i32
    return %c0_i32, %c0_i32_0 : i32, i32
  }
  func.func @transform_5(%arg0: i32) -> (i32, i32) {
    %c0_i32 = arith.constant 0 : i32
    %c0_i32_0 = arith.constant 0 : i32
    %c0_i32_1 = arith.constant 0 : i32
    return %c0_i32, %c0_i32_0 : i32, i32
  }
  func.func @transform_6(%arg0: i32) -> (i32, i32) {
    %c0_i32 = arith.constant 0 : i32
    %c0_i32_0 = arith.constant 0 : i32
    %c0_i32_1 = arith.constant 0 : i32
    return %c0_i32, %c0_i32_0 : i32, i32
  }
  func.func @transform_7(%arg0: i32) -> (i32, i32) {
    %c0_i32 = arith.constant 0 : i32
    %c0_i32_0 = arith.constant 0 : i32
    return %arg0, %c0_i32 : i32, i32
  }
  func.func @transform_8(%arg0: i32) -> (i32, i32) {
    %c0_i32 = arith.constant 0 : i32
    %c0_i32_0 = arith.constant 0 : i32
    return %arg0, %c0_i32 : i32, i32
  }
}

</mosaic_0001>

<bundles_post_ra>
// kernel: tpu_custom_call.1
= control target key start
LH: loop header
LB: loop body
LE: loop exit
PB: predicated region body
PF: predicated region fallthrough
CT: control target
= control target key end

     0   :  { %13 = vsyncpa [#allocation3], 0  ;;  %s2502_s0 = inlined_call_operand.hbm [shape: f32[8,256], index: 0, kind: input, shape index: {}]   ;;  %s2503_s1 = inlined_call_operand.hbm [shape: bf16[256,512], index: 1, kind: input, shape index: {}]   ;;  %s2504_s2 = inlined_call_operand.hbm [shape: f32[1,512], index: 2, kind: input, shape index: {}]   ;;  %s2505_s3 = inlined_call_operand.hbm [shape: bf16[512,256], index: 3, kind: input, shape index: {}]   ;;  %s2506_s4 = inlined_call_operand.vmem [shape: f32[1,256], index: 4, kind: input, shape index: {}]   ;;  %s2507_s5 = inlined_call_operand.hbm [shape: bf16[256,256], index: 5, kind: input, shape index: {}]   ;;  %s2508_s6 = inlined_call_operand.vmem [shape: f32[1,256], index: 6, kind: input, shape index: {}]   ;;  %s2509_s7 = inlined_call_operand.hbm [shape: f32[8,128], index: 7, kind: input, shape index: {}]   ;;  %s2510_s8 = inlined_call_operand.hbm [shape: f32[8,256], index: 8, kind: output, shape index: {}]  }
   0x1   :  { %14 = vsyncpa [#allocation6], 0 }
   0x2   :  { %15 = vsyncpa [#allocation9], 0 }
   0x3   :  { %16 = vsyncpa [#allocation12], 0  ;;  %s33_s29 = sshll.u32 %s2503_s1, 4  ;;  %s34_s29 = int_to_ptr.hbm [resolvable:$true] %s33_s29 }
   0x4   :  { %17 = vsyncpa [#allocation4], 0  ;;  %s2395_s30 = smov [#allocation5]   ;;  %s57_s12 = sshll.u32 %s2505_s3, 4  ;;  %s58_s12 = int_to_ptr.hbm [resolvable:$true] %s57_s12 }
   0x5   :  { %s35_s9 = sshll.u32 %s2395_s30, 4  ;;  %s2396_s13 = smov 256   ;;  %s36_s9 = int_to_ptr.vmem [resolvable:$true] %s35_s9 }
   0x6   :  { %s2397_s14 = smov 16   ;;  %s2398_s15 = smov [#allocation8]  }
   0x7   :  { %41 = dma.hbm_to_vmem [thread:$0]  %s34_s29, 8192, %s36_s9, [#allocation6], %s2396_s13, %s2396_s13, %s2397_s14  }
   0x8   :  { %s59_s16 = sshll.u32 %s2398_s15, 4  ;;  %s2399_s17 = smov 128   ;;  %s60_s16 = int_to_ptr.vmem [resolvable:$true] %s59_s16 }
   0x9   :  { %s2400_s18 = smov 8   ;;  %s23_s20 = sshll.u32 %s2502_s0, 4  ;;  %s24_s20 = int_to_ptr.hbm [resolvable:$true] %s23_s20 }
   0xa   :  { %65 = dma.hbm_to_vmem [thread:$0]  %s58_s12, 8192, %s60_s16, [#allocation9], %s2399_s17, %s2399_s17, %s2400_s18  }
   0xb   :  { %s2401_s21 = smov [#allocation2]   ;;  %s47_s24 = sshll.u32 %s2504_s2, 4  ;;  %s48_s24 = int_to_ptr.hbm [resolvable:$true] %s47_s24 }
   0xc   :  { %s25_s22 = sshll.u32 %s2401_s21, 4  ;;  %s2402_s25 = smov [#allocation7]   ;;  %s26_s22 = int_to_ptr.vmem [resolvable:$true] %s25_s22 }
   0xd   :  { %28 = dma.hbm_to_vmem [thread:$0]  %s24_s20, 256, %s26_s22, [#allocation3]  }
   0xe   :  { %s49_s26 = sshll.u32 %s2402_s25, 4  ;;  %s72_s29 = sshll.u32 %s2507_s5, 4  ;;  %s50_s26 = int_to_ptr.vmem [resolvable:$true] %s49_s26  ;;  %s73_s29 = int_to_ptr.hbm [resolvable:$true] %s72_s29 }
   0xf   :  { %52 = dma.hbm_to_vmem [thread:$0]  %s48_s24, 64, %s50_s26, [#allocation6]  }
  0x10   :  { %s88_s9 = sshll.u32 %s2509_s7, 4  ;;  %s2403_s10 = smov [#allocation10]   ;;  %s89_s9 = int_to_ptr.hbm [resolvable:$true] %s88_s9 }
  0x11   :  { %s74_s11 = sshll.u32 %s2403_s10, 4  ;;  %s2404_s2 = smov [#allocation11]   ;;  %s75_s11 = int_to_ptr.vmem [resolvable:$true] %s74_s11 }
  0x12   :  { %80 = dma.hbm_to_vmem [thread:$0]  %s73_s29, 4096, %s75_s11, [#allocation9], %s2399_s17, %s2399_s17, %s2400_s18  }
  0x13   :  { %s90_s12 = sshll.u32 %s2404_s2, 4  ;;  %s91_s12 = int_to_ptr.vmem [resolvable:$true] %s90_s12 }
  0x14   :  { %93 = dma.hbm_to_vmem [thread:$0]  %s89_s9, 128, %s91_s12, [#allocation12]  }
  0x15   :  { %2385 = dma.done.wait [#allocation3], 256  }
  0x16   :  { %2386 = vsyncadd [#allocation3], 4294967040 }
  0x17   :  { %2387 = dma.done.wait [#allocation6], 8256  }
  0x18   :  { %2388 = vsyncadd [#allocation6], 4294959040 }
  0x19   :  { %2389 = dma.done.wait [#allocation9], 12288  }
  0x1a   :  { %2390 = vsyncadd [#allocation9], 4294955008 }
  0x1b   :  { %2391 = dma.done.wait [#allocation12], 128  }
  0x1c   :  { %2392 = vsyncadd [#allocation12], 4294967168  ;;  %v1518_v0 = vld [vmem:[#allocation5 + $0xe0] sm:$0xf]  ;;  %v2074_v1 = vld [vmem:[#allocation5 + $0xec] sm:$0xf0] }
  0x1d   :  { %v1646_v2 = vld [vmem:[#allocation5 + $0x1e0] sm:$0xf]  ;;  %v1519_v3 = vor.u32 %v2074_v1, %v1518_v0  ;;  %v2106_v4 = vld [vmem:[#allocation5 + $0x1ec] sm:$0xf0]  ;;  %v2072_v5 = vld [vmem:[#allocation5 + $0xe4] sm:$0xf] }
  0x1e   :  { %v1520_v6 = vld [vmem:[#allocation5 + $0xf0] sm:$0xf0]  ;;  %v1647_v7 = vor.u32 %v2106_v4, %v1646_v2  ;;  %v2104_v9 = vld [vmem:[#allocation5 + $0x1e4] sm:$0xf]  ;;  %v1502_v11 = vld [vmem:[#allocation5 + $0xc0] sm:$0xf] }
  0x1f   :  { %v1523_v8 = vor.u32 %v2072_v5, %v1520_v6  ;;  %v1648_v10 = vld [vmem:[#allocation5 + $0x1f0] sm:$0xf0]  ;;  %516 = vmatpush.bf16.msra.mxu0 %v1519_v3  ;;  %v2070_v13 = vld [vmem:[#allocation5 + $0xcc] sm:$0xf0]  ;;  %v1630_v14 = vld [vmem:[#allocation5 + $0x1c0] sm:$0xf] }
  0x20   :  { %v1651_v12 = vor.u32 %v2104_v9, %v1648_v10  ;;  %v2102_v15 = vld [vmem:[#allocation5 + $0x1cc] sm:$0xf0]  ;;  %529 = vmatpush.bf16.msra.mxu1 %v1647_v7  ;;  %v1503_v16 = vor.u32 %v2070_v13, %v1502_v11  ;;  %v2068_v18 = vld [vmem:[#allocation5 + $0xc4] sm:$0xf]  ;;  %v1504_v19 = vld [vmem:[#allocation5 + $0xd0] sm:$0xf0] }
  0x21   :  { %542 = vmatpush.bf16.msra.mxu2 %v1523_v8  ;;  %v1631_v17 = vor.u32 %v2102_v15, %v1630_v14  ;;  %v2100_v20 = vld [vmem:[#allocation5 + $0x1c4] sm:$0xf]  ;;  %v1507_v21 = vor.u32 %v2068_v18, %v1504_v19  ;;  %v1632_v22 = vld [vmem:[#allocation5 + $0x1d0] sm:$0xf0]  ;;  %v1486_v23 = vld [vmem:[#allocation5 + $0xa0] sm:$0xf] }
  0x22   :  { %555 = vmatpush.bf16.msra.mxu3 %v1651_v12  ;;  %v2066_v24 = vld [vmem:[#allocation5 + $0xac] sm:$0xf0]  ;;  %v1635_v25 = vor.u32 %v2100_v20, %v1632_v22  ;;  %v1614_v26 = vld [vmem:[#allocation5 + $0x1a0] sm:$0xf]  ;;  %v2064_v28 = vld [vmem:[#allocation5 + $0xa4] sm:$0xf] }
  0x23   :  { %v2098_v27 = vld [vmem:[#allocation5 + $0x1ac] sm:$0xf0]  ;;  %517 = vmatpush.bf16.msra.mxu0 %v1503_v16  ;;  %v1487_v29 = vor.u32 %v2066_v24, %v1486_v23  ;;  %v1488_v30 = vld [vmem:[#allocation5 + $0xb0] sm:$0xf0]  ;;  %v2096_v31 = vld [vmem:[#allocation5 + $0x1a4] sm:$0xf] }
  0x24   :  { %v1616_v32 = vld [vmem:[#allocation5 + $0x1b0] sm:$0xf0]  ;;  %530 = vmatpush.bf16.msra.mxu1 %v1631_v17  ;;  %v1615_v33 = vor.u32 %v2098_v27, %v1614_v26  ;;  %v1491_v34 = vor.u32 %v2064_v28, %v1488_v30  ;;  %v1470_v35 = vld [vmem:[#allocation5 + $0x80] sm:$0xf]  ;;  %v2062_v36 = vld [vmem:[#allocation5 + $0x8c] sm:$0xf0] }
  0x25   :  { %543 = vmatpush.bf16.msra.mxu2 %v1507_v21  ;;  %v1598_v37 = vld [vmem:[#allocation5 + $0x180] sm:$0xf]  ;;  %v1619_v38 = vor.u32 %v2096_v31, %v1616_v32  ;;  %v2094_v39 = vld [vmem:[#allocation5 + $0x18c] sm:$0xf0]  ;;  %v2060_v40 = vld [vmem:[#allocation5 + $0x84] sm:$0xf]  ;;  %v1471_v44 = vor.u32 %v2062_v36, %v1470_v35 }
  0x26   :  { %556 = vmatpush.bf16.msra.mxu3 %v1635_v25  ;;  %v1472_v41 = vld [vmem:[#allocation5 + $0x90] sm:$0xf0]  ;;  %v2092_v42 = vld [vmem:[#allocation5 + $0x184] sm:$0xf]  ;;  %v1599_v45 = vor.u32 %v2094_v39, %v1598_v37  ;;  %v1454_v47 = vld [vmem:[#allocation5 + $0x60] sm:$0xf] }
  0x27   :  { %v1600_v43 = vld [vmem:[#allocation5 + $0x190] sm:$0xf0]  ;;  %518 = vmatpush.bf16.msra.mxu0 %v1487_v29  ;;  %v1475_v46 = vor.u32 %v2060_v40, %v1472_v41  ;;  %v2058_v48 = vld [vmem:[#allocation5 + $0x6c] sm:$0xf0]  ;;  %v1582_v49 = vld [vmem:[#allocation5 + $0x160] sm:$0xf] }
  0x28   :  { %531 = vmatpush.bf16.msra.mxu1 %v1615_v33  ;;  %v1603_v50 = vor.u32 %v2092_v42, %v1600_v43  ;;  %v2090_v51 = vld [vmem:[#allocation5 + $0x16c] sm:$0xf0]  ;;  %v2056_v52 = vld [vmem:[#allocation5 + $0x64] sm:$0xf]  ;;  %v1456_v53 = vld [vmem:[#allocation5 + $0x70] sm:$0xf0]  ;;  %v1455_v56 = vor.u32 %v2058_v48, %v1454_v47 }
  0x29   :  { %544 = vmatpush.bf16.msra.mxu2 %v1491_v34  ;;  %v2088_v54 = vld [vmem:[#allocation5 + $0x164] sm:$0xf]  ;;  %v1584_v55 = vld [vmem:[#allocation5 + $0x170] sm:$0xf0]  ;;  %v1583_v57 = vor.u32 %v2090_v51, %v1582_v49  ;;  %v1459_v58 = vor.u32 %v2056_v52, %v1456_v53  ;;  %v1438_v59 = vld [vmem:[#allocation5 + $0x40] sm:$0xf] }
  0x2a   :  { %557 = vmatpush.bf16.msra.mxu3 %v1619_v38  ;;  %v2054_v60 = vld [vmem:[#allocation5 + $0x4c] sm:$0xf0]  ;;  %v1566_v61 = vld [vmem:[#allocation5 + $0x140] sm:$0xf]  ;;  %v1587_v62 = vor.u32 %v2088_v54, %v1584_v55  ;;  %v2052_v0 = vld [vmem:[#allocation5 + $0x44] sm:$0xf] }
  0x2b   :  { %519 = vmatpush.bf16.msra.mxu0 %v1471_v44  ;;  %v2086_v63 = vld [vmem:[#allocation5 + $0x14c] sm:$0xf0]  ;;  %v1440_v1 = vld [vmem:[#allocation5 + $0x50] sm:$0xf0]  ;;  %v2084_v2 = vld [vmem:[#allocation5 + $0x144] sm:$0xf]  ;;  %v1439_v4 = vor.u32 %v2054_v60, %v1438_v59 }
  0x2c   :  { %532 = vmatpush.bf16.msra.mxu1 %v1599_v45  ;;  %v1568_v3 = vld [vmem:[#allocation5 + $0x150] sm:$0xf0]  ;;  %v1567_v5 = vor.u32 %v2086_v63, %v1566_v61  ;;  %v1443_v6 = vor.u32 %v2052_v0, %v1440_v1  ;;  %v1422_v7 = vld [vmem:[#allocation5 + $0x20] sm:$0xf]  ;;  %v2050_v8 = vld [vmem:[#allocation5 + $0x2c] sm:$0xf0] }
  0x2d   :  { %545 = vmatpush.bf16.msra.mxu2 %v1475_v46  ;;  %v1550_v9 = vld [vmem:[#allocation5 + $0x120] sm:$0xf]  ;;  %v1571_v10 = vor.u32 %v2084_v2, %v1568_v3  ;;  %v2082_v11 = vld [vmem:[#allocation5 + $0x12c] sm:$0xf0]  ;;  %v2048_v12 = vld [vmem:[#allocation5 + $0x24] sm:$0xf]  ;;  %v1423_v16 = vor.u32 %v2050_v8, %v1422_v7 }
  0x2e   :  { %558 = vmatpush.bf16.msra.mxu3 %v1603_v50  ;;  %v1424_v13 = vld [vmem:[#allocation5 + $0x30] sm:$0xf0]  ;;  %v2080_v14 = vld [vmem:[#allocation5 + $0x124] sm:$0xf]  ;;  %v1406_v17 = vld [vmem:[#allocation5] sm:$0xf]  ;;  %v1551_v19 = vor.u32 %v2082_v11, %v1550_v9 }
  0x2f   :  { %520 = vmatpush.bf16.msra.mxu0 %v1455_v56  ;;  %v1552_v15 = vld [vmem:[#allocation5 + $0x130] sm:$0xf0]  ;;  %v2046_v18 = vld [vmem:[#allocation5 + $0xc] sm:$0xf0]  ;;  %v1427_v20 = vor.u32 %v2048_v12, %v1424_v13  ;;  %v1534_v21 = vld [vmem:[#allocation5 + $0x100] sm:$0xf] }
  0x30   :  { %533 = vmatpush.bf16.msra.mxu1 %v1583_v57  ;;  %v2078_v22 = vld [vmem:[#allocation5 + $0x10c] sm:$0xf0]  ;;  %v2044_v23 = vld [vmem:[#allocation5 + $0x4] sm:$0xf]  ;;  %v1555_v24 = vor.u32 %v2080_v14, %v1552_v15  ;;  %v1408_v25 = vld [vmem:[#allocation5 + $0x10] sm:$0xf0]  ;;  %v1407_v31 = vor.u32 %v2046_v18, %v1406_v17 }
  0x31   :  { %546 = vmatpush.bf16.msra.mxu2 %v1459_v58  ;;  %v2076_v26 = vld [vmem:[#allocation5 + $0x104] sm:$0xf]  ;;  %v1536_v27 = vld [vmem:[#allocation5 + $0x110] sm:$0xf0]  ;;  %v1526_v28 = vld [vmem:[#allocation5 + $0xe8] sm:$0xf]  ;;  %v1535_v35 = vor.u32 %v2078_v22, %v1534_v21  ;;  %v1411_v36 = vor.u32 %v2044_v23, %v1408_v25 }
  0x32   :  { %559 = vmatpush.bf16.msra.mxu3 %v1587_v62  ;;  %v2075_v29 = vld [vmem:[#allocation5 + $0xf4] sm:$0xf0]  ;;  %v1654_v30 = vld [vmem:[#allocation5 + $0x1e8] sm:$0xf]  ;;  %v2073_v33 = vld [vmem:[#allocation5 + $0xec] sm:$0xf]  ;;  %v1539_v40 = vor.u32 %v2076_v26, %v1536_v27 }
  0x33   :  { %521 = vmatpush.bf16.msra.mxu0 %v1439_v4  ;;  %v2107_v32 = vld [vmem:[#allocation5 + $0x1f4] sm:$0xf0]  ;;  %v1528_v34 = vld [vmem:[#allocation5 + $0xf8] sm:$0xf0]  ;;  %v2105_v37 = vld [vmem:[#allocation5 + $0x1ec] sm:$0xf]  ;;  %v1527_v41 = vor.u32 %v2075_v29, %v1526_v28 }
  0x34   :  { %534 = vmatpush.bf16.msra.mxu1 %v1567_v5  ;;  %v1656_v38 = vld [vmem:[#allocation5 + $0x1f8] sm:$0xf0]  ;;  %v118_v39 = vld [vmem:[#allocation2] sm:$0xff]  ;;  %v1655_v43 = vor.u32 %v2107_v32, %v1654_v30  ;;  %v1531_v44 = vor.u32 %v2073_v33, %v1528_v34  ;;  %v1510_v45 = vld [vmem:[#allocation5 + $0xc8] sm:$0xf]  ;;  %s2405_s14 = smov [#allocation13]  }
  0x35   :  { %547 = vmatpush.bf16.msra.mxu2 %v1443_v6  ;;  %v119_v42 = vld [vmem:[#allocation2 + $0x8] sm:$0xff]  ;;  %v1638_v47 = vld [vmem:[#allocation5 + $0x1c8] sm:$0xf]  ;;  %v1659_v48 = vor.u32 %v2105_v37, %v1656_v38  ;;  %v2469_v49 = vpack.c.bf16 %v118_v39, %v118_v39  ;;  %v2069_v51 = vld [vmem:[#allocation5 + $0xcc] sm:$0xf]  ;;  %s1389_s15 = sshll.u32 %s2405_s14, 4  ;;  %s1390_s15 = int_to_ptr.vmem [resolvable:$true] %s1389_s15 }
  0x36   :  { %560 = vmatpush.bf16.msra.mxu3 %v1571_v10  ;;  %v2071_v46 = vld [vmem:[#allocation5 + $0xd4] sm:$0xf0]  ;;  %v1512_v52 = vld [vmem:[#allocation5 + $0xd8] sm:$0xf0]  ;;  %v2471_v53 = vpack.c.bf16 %v119_v42, %v119_v42  ;;  %v2101_v54 = vld [vmem:[#allocation5 + $0x1cc] sm:$0xf] }
  0x37   :  { %522 = vmatpush.bf16.msra.mxu0 %v1423_v16  ;;  %v2103_v50 = vld [vmem:[#allocation5 + $0x1d4] sm:$0xf0]  ;;  %v1640_v55 = vld [vmem:[#allocation5 + $0x1d8] sm:$0xf0]  ;;  %v1511_v56 = vor.u32 %v2071_v46, %v1510_v45  ;;  %v1515_v58 = vor.u32 %v2069_v51, %v1512_v52  ;;  %v1494_v59 = vld [vmem:[#allocation5 + $0xa8] sm:$0xf] }
  0x38   :  { %535 = vmatpush.bf16.msra.mxu1 %v1551_v19  ;;  %v1639_v57 = vor.u32 %v2103_v50, %v1638_v47  ;;  %v2067_v60 = vld [vmem:[#allocation5 + $0xb4] sm:$0xf0]  ;;  %v1622_v61 = vld [vmem:[#allocation5 + $0x1a8] sm:$0xf]  ;;  %v1643_v62 = vor.u32 %v2101_v54, %v1640_v55  ;;  %v2065_v0 = vld [vmem:[#allocation5 + $0xac] sm:$0xf] }
  0x39   :  { %548 = vmatpush.bf16.msra.mxu2 %v1427_v20  ;;  %v2099_v63 = vld [vmem:[#allocation5 + $0x1b4] sm:$0xf0]  ;;  %v1496_v1 = vld [vmem:[#allocation5 + $0xb8] sm:$0xf0]  ;;  %v2097_v2 = vld [vmem:[#allocation5 + $0x1ac] sm:$0xf]  ;;  %v1495_v4 = vor.u32 %v2067_v60, %v1494_v59 }
  0x3a   :  { %561 = vmatpush.bf16.msra.mxu3 %v1555_v24  ;;  %v1624_v3 = vld [vmem:[#allocation5 + $0x1b8] sm:$0xf0]  ;;  %v1623_v5 = vor.u32 %v2099_v63, %v1622_v61  ;;  %v1499_v6 = vor.u32 %v2065_v0, %v1496_v1  ;;  %v1478_v7 = vld [vmem:[#allocation5 + $0x88] sm:$0xf]  ;;  %v2063_v8 = vld [vmem:[#allocation5 + $0x94] sm:$0xf0] }
  0x3b   :  { %523 = vmatpush.bf16.msra.mxu0 %v1407_v31  ;;  %v1606_v9 = vld [vmem:[#allocation5 + $0x188] sm:$0xf]  ;;  %v1627_v10 = vor.u32 %v2097_v2, %v1624_v3  ;;  %v2095_v11 = vld [vmem:[#allocation5 + $0x194] sm:$0xf0]  ;;  %v2061_v12 = vld [vmem:[#allocation5 + $0x8c] sm:$0xf]  ;;  %v1479_v16 = vor.u32 %v2063_v8, %v1478_v7 }
  0x3c   :  { %536 = vmatpush.bf16.msra.mxu1 %v1535_v35  ;;  %v1480_v13 = vld [vmem:[#allocation5 + $0x98] sm:$0xf0]  ;;  %v2093_v14 = vld [vmem:[#allocation5 + $0x18c] sm:$0xf]  ;;  %v1607_v17 = vor.u32 %v2095_v11, %v1606_v9  ;;  %v1462_v19 = vld [vmem:[#allocation5 + $0x68] sm:$0xf] }
  0x3d   :  { %549 = vmatpush.bf16.msra.mxu2 %v1411_v36  ;;  %v1608_v15 = vld [vmem:[#allocation5 + $0x198] sm:$0xf0]  ;;  %v1483_v18 = vor.u32 %v2061_v12, %v1480_v13  ;;  %v2059_v20 = vld [vmem:[#allocation5 + $0x74] sm:$0xf0]  ;;  %v1590_v21 = vld [vmem:[#allocation5 + $0x168] sm:$0xf] }
  0x3e   :  { %562 = vmatpush.bf16.msra.mxu3 %v1539_v40  ;;  %524 = vmatmul.bf16.vlgmr.msra.gmra.mxu0 %v2469_v49  ;;  %v1611_v22 = vor.u32 %v2093_v14, %v1608_v15  ;;  %v2091_v23 = vld [vmem:[#allocation5 + $0x174] sm:$0xf0]  ;;  %v2057_v24 = vld [vmem:[#allocation5 + $0x6c] sm:$0xf]  ;;  %v1464_v25 = vld [vmem:[#allocation5 + $0x78] sm:$0xf0]  ;;  %v1463_v28 = vor.u32 %v2059_v20, %v1462_v19 }
  0x3f   :  { %568 = vmatpush.bf16.msrb.mxu0 %v1527_v41  ;;  %537 = vmatmul.bf16.vlgmr.msra.gmra.mxu1 %v2471_v53  ;;  %v2089_v26 = vld [vmem:[#allocation5 + $0x16c] sm:$0xf]  ;;  %v1592_v27 = vld [vmem:[#allocation5 + $0x178] sm:$0xf0]  ;;  %v1591_v29 = vor.u32 %v2091_v23, %v1590_v21  ;;  %v1467_v30 = vor.u32 %v2057_v24, %v1464_v25  ;;  %v1446_v31 = vld [vmem:[#allocation5 + $0x48] sm:$0xf] }
  0x40   :  { %581 = vmatpush.bf16.msrb.mxu1 %v1655_v43  ;;  %550 = vmatmul.bf16.vlgmr.msra.gmra.mxu2 %v2469_v49  ;;  %v2055_v32 = vld [vmem:[#allocation5 + $0x54] sm:$0xf0]  ;;  %v1574_v33 = vld [vmem:[#allocation5 + $0x148] sm:$0xf]  ;;  %v1595_v34 = vor.u32 %v2089_v26, %v1592_v27  ;;  %v2053_v36 = vld [vmem:[#allocation5 + $0x4c] sm:$0xf] }
  0x41   :  { %594 = vmatpush.bf16.msrb.mxu2 %v1531_v44  ;;  %563 = vmatmul.bf16.vlgmr.msra.gmra.mxu3 %v2471_v53  ;;  %v2087_v35 = vld [vmem:[#allocation5 + $0x154] sm:$0xf0]  ;;  %v1448_v37 = vld [vmem:[#allocation5 + $0x58] sm:$0xf0]  ;;  %v2085_v38 = vld [vmem:[#allocation5 + $0x14c] sm:$0xf]  ;;  %v1447_v40 = vor.u32 %v2055_v32, %v1446_v31 }
  0x42   :  { %607 = vmatpush.bf16.msrb.mxu3 %v1659_v48  ;;  %v1576_v39 = vld [vmem:[#allocation5 + $0x158] sm:$0xf0]  ;;  %v1575_v41 = vor.u32 %v2087_v35, %v1574_v33  ;;  %v1451_v42 = vor.u32 %v2053_v36, %v1448_v37  ;;  %v1430_v43 = vld [vmem:[#allocation5 + $0x28] sm:$0xf]  ;;  %v2051_v44 = vld [vmem:[#allocation5 + $0x34] sm:$0xf0] }
  0x43   :  { %569 = vmatpush.bf16.msrb.mxu0 %v1511_v56  ;;  %v1558_v45 = vld [vmem:[#allocation5 + $0x128] sm:$0xf]  ;;  %v1579_v46 = vor.u32 %v2085_v38, %v1576_v39  ;;  %v2083_v47 = vld [vmem:[#allocation5 + $0x134] sm:$0xf0]  ;;  %v2049_v48 = vld [vmem:[#allocation5 + $0x2c] sm:$0xf]  ;;  %v1431_v54 = vor.u32 %v2051_v44, %v1430_v43 }
  0x44   :  { %582 = vmatpush.bf16.msrb.mxu1 %v1639_v57  ;;  %v1432_v50 = vld [vmem:[#allocation5 + $0x38] sm:$0xf0]  ;;  %v2081_v51 = vld [vmem:[#allocation5 + $0x12c] sm:$0xf]  ;;  %v1414_v55 = vld [vmem:[#allocation5 + $0x8] sm:$0xf]  ;;  %v1559_v56 = vor.u32 %v2083_v47, %v1558_v45 }
  0x45   :  { %595 = vmatpush.bf16.msrb.mxu2 %v1515_v58  ;;  %v1560_v52 = vld [vmem:[#allocation5 + $0x138] sm:$0xf0]  ;;  %v1435_v57 = vor.u32 %v2049_v48, %v1432_v50  ;;  %v2047_v58 = vld [vmem:[#allocation5 + $0x14] sm:$0xf0]  ;;  %v1542_v59 = vld [vmem:[#allocation5 + $0x108] sm:$0xf] }
  0x46   :  { %608 = vmatpush.bf16.msrb.mxu3 %v1643_v62  ;;  %v2079_v60 = vld [vmem:[#allocation5 + $0x114] sm:$0xf0]  ;;  %v1563_v61 = vor.u32 %v2081_v51, %v1560_v52  ;;  %v2045_v62 = vld [vmem:[#allocation5 + $0xc] sm:$0xf]  ;;  %v1416_v63 = vld [vmem:[#allocation5 + $0x18] sm:$0xf0] }
  0x47   :  { %570 = vmatpush.bf16.msrb.mxu0 %v1495_v4  ;;  %v2077_v0 = vld [vmem:[#allocation5 + $0x10c] sm:$0xf]  ;;  %v1544_v1 = vld [vmem:[#allocation5 + $0x118] sm:$0xf0]  ;;  %v1718_v2 = vld [vmem:[#allocation8 + $0x70] sm:$0xf]  ;;  %v1415_v4 = vor.u32 %v2047_v58, %v1414_v55  ;;  %v1543_v7 = vor.u32 %v2079_v60, %v1542_v59  ;;  %v1419_v8 = vor.u32 %v2045_v62, %v1416_v63 }
  0x48   :  { %583 = vmatpush.bf16.msrb.mxu1 %v1623_v5  ;;  %v2123_v3 = vld [vmem:[#allocation8 + $0x74] sm:$0xf0]  ;;  %v1782_v5 = vld [vmem:[#allocation8 + $0xf0] sm:$0xf]  ;;  %v1547_v9 = vor.u32 %v2077_v0, %v1544_v1  ;;  %v1710_v13 = vld [vmem:[#allocation8 + $0x60] sm:$0xf] }
  0x49   :  { %596 = vmatpush.bf16.msrb.mxu2 %v1499_v6  ;;  %v2139_v6 = vld [vmem:[#allocation8 + $0xf4] sm:$0xf0]  ;;  %v1846_v11 = vld [vmem:[#allocation8 + $0x170] sm:$0xf]  ;;  %v2121_v14 = vld [vmem:[#allocation8 + $0x64] sm:$0xf0] }
  0x4a   :  { %609 = vmatpush.bf16.msrb.mxu3 %v1627_v10  ;;  %v1719_v10 = vor.u32 %v2123_v3, %v1718_v2  ;;  %v2155_v12 = vld [vmem:[#allocation8 + $0x174] sm:$0xf0]  ;;  %v1783_v15 = vor.u32 %v2139_v6, %v1782_v5  ;;  %v1711_v19 = vor.u32 %v2121_v14, %v1710_v13  ;;  %v1838_v20 = vld [vmem:[#allocation8 + $0x160] sm:$0xf]  ;;  %v2153_v21 = vld [vmem:[#allocation8 + $0x164] sm:$0xf0] }
  0x4b   :  { %571 = vmatpush.bf16.msrb.mxu0 %v1479_v16  ;;  %v1774_v16 = vld [vmem:[#allocation8 + $0xe0] sm:$0xf]  ;;  %v2119_v23 = vld [vmem:[#allocation8 + $0x54] sm:$0xf0]  ;;  %v1766_v25 = vld [vmem:[#allocation8 + $0xd0] sm:$0xf]  ;;  %v1839_v27 = vor.u32 %v2153_v21, %v1838_v20 }
  0x4c   :  { %584 = vmatpush.bf16.msrb.mxu1 %v1607_v17  ;;  %v2137_v17 = vld [vmem:[#allocation8 + $0xe4] sm:$0xf0]  ;;  %v2135_v26 = vld [vmem:[#allocation8 + $0xd4] sm:$0xf0]  ;;  %v1758_v32 = vld [vmem:[#allocation8 + $0xc0] sm:$0xf] }
  0x4d   :  { %597 = vmatpush.bf16.msrb.mxu2 %v1483_v18  ;;  %v1847_v18 = vor.u32 %v2155_v12, %v1846_v11  ;;  %v1775_v24 = vor.u32 %v2137_v17, %v1774_v16  ;;  %v1767_v31 = vor.u32 %v2135_v26, %v1766_v25  ;;  %v2133_v33 = vld [vmem:[#allocation8 + $0xc4] sm:$0xf0]  ;;  %v1686_v35 = vld [vmem:[#allocation8 + $0x30] sm:$0xf]  ;;  %v2131_v38 = vld [vmem:[#allocation8 + $0xb4] sm:$0xf0] }
  0x4e   :  { %610 = vmatpush.bf16.msrb.mxu3 %v1611_v22  ;;  %v1702_v22 = vld [vmem:[#allocation8 + $0x50] sm:$0xf]  ;;  %v1759_v36 = vor.u32 %v2133_v33, %v1758_v32  ;;  %v1678_v39 = vld [vmem:[#allocation8 + $0x20] sm:$0xf]  ;;  %v2129_v43 = vld [vmem:[#allocation8 + $0xa4] sm:$0xf0] }
  0x4f   :  { %572 = vmatpush.bf16.msrb.mxu0 %v1463_v28  ;;  %v1703_v28 = vor.u32 %v2119_v23, %v1702_v22  ;;  %v1750_v37 = vld [vmem:[#allocation8 + $0xb0] sm:$0xf]  ;;  %v2127_v50 = vld [vmem:[#allocation8 + $0x94] sm:$0xf0]  ;;  %v1662_v52 = vld [vmem:[#allocation8] sm:$0xf] }
  0x50   :  { %585 = vmatpush.bf16.msrb.mxu1 %v1591_v29  ;;  %v1694_v29 = vld [vmem:[#allocation8 + $0x40] sm:$0xf]  ;;  %v1670_v45 = vld [vmem:[#allocation8 + $0x10] sm:$0xf]  ;;  %v2122_v55 = vld [vmem:[#allocation8 + $0x74] sm:$0xf] }
  0x51   :  { %598 = vmatpush.bf16.msrb.mxu2 %v1467_v30  ;;  %v2117_v30 = vld [vmem:[#allocation8 + $0x44] sm:$0xf0]  ;;  %v1734_v48 = vld [vmem:[#allocation8 + $0x90] sm:$0xf]  ;;  %v1726_v58 = vld [vmem:[#allocation8 + $0x80] sm:$0xf] }
  0x52   :  { %611 = vmatpush.bf16.msrb.mxu3 %v1595_v34  ;;  %v1695_v34 = vor.u32 %v2117_v30, %v1694_v29  ;;  %v2125_v59 = vld [vmem:[#allocation8 + $0x84] sm:$0xf0]  ;;  %v2120_v63 = vld [vmem:[#allocation8 + $0x64] sm:$0xf]  ;;  %v1712_v0 = vld [vmem:[#allocation8 + $0x68] sm:$0xf0] }
  0x53   :  { %573 = vmatpush.bf16.msrb.mxu0 %v1447_v40  ;;  %v2113_v40 = vld [vmem:[#allocation8 + $0x24] sm:$0xf0]  ;;  %v1727_v62 = vor.u32 %v2125_v59, %v1726_v58  ;;  %v1715_v1 = vor.u32 %v2120_v63, %v1712_v0  ;;  %v1910_v2 = vld [vmem:[#allocation8 + $0x1f0] sm:$0xf]  ;;  %v2171_v3 = vld [vmem:[#allocation8 + $0x1f4] sm:$0xf0] }
  0x54   :  { %586 = vmatpush.bf16.msrb.mxu1 %v1575_v41  ;;  %v1751_v41 = vor.u32 %v2131_v38, %v1750_v37  ;;  %v1679_v44 = vor.u32 %v2113_v40, %v1678_v39  ;;  %v1911_v5 = vor.u32 %v2171_v3, %v1910_v2  ;;  %v1784_v6 = vld [vmem:[#allocation8 + $0xf8] sm:$0xf0]  ;;  %v1902_v14 = vld [vmem:[#allocation8 + $0x1e0] sm:$0xf]  ;;  %v2136_v16 = vld [vmem:[#allocation8 + $0xe4] sm:$0xf] }
  0x55   :  { %599 = vmatpush.bf16.msrb.mxu2 %v1451_v42  ;;  %v1742_v42 = vld [vmem:[#allocation8 + $0xa0] sm:$0xf]  ;;  %v1704_v12 = vld [vmem:[#allocation8 + $0x58] sm:$0xf0]  ;;  %v2149_v21 = vld [vmem:[#allocation8 + $0x144] sm:$0xf0] }
  0x56   :  { %612 = vmatpush.bf16.msrb.mxu3 %v1579_v46  ;;  %v2111_v46 = vld [vmem:[#allocation8 + $0x14] sm:$0xf0]  ;;  %v1743_v47 = vor.u32 %v2129_v43, %v1742_v42  ;;  %v1822_v20 = vld [vmem:[#allocation8 + $0x140] sm:$0xf]  ;;  %v2116_v22 = vld [vmem:[#allocation8 + $0x44] sm:$0xf] }
  0x57   :  { %574 = vmatpush.bf16.msrb.mxu0 %v1431_v54  ;;  %v1671_v51 = vor.u32 %v2111_v46, %v1670_v45  ;;  %v2109_v54 = vld [vmem:[#allocation8 + $0x4] sm:$0xf0]  ;;  %v1823_v23 = vor.u32 %v2149_v21, %v1822_v20  ;;  %v1894_v26 = vld [vmem:[#allocation8 + $0x1d0] sm:$0xf]  ;;  %v2134_v29 = vld [vmem:[#allocation8 + $0xd4] sm:$0xf] }
  0x58   :  { %587 = vmatpush.bf16.msrb.mxu1 %v1559_v56  ;;  %v1735_v56 = vor.u32 %v2127_v50, %v1734_v48  ;;  %v1663_v60 = vor.u32 %v2109_v54, %v1662_v52  ;;  %v1768_v30 = vld [vmem:[#allocation8 + $0xd8] sm:$0xf0]  ;;  %v1814_v32 = vld [vmem:[#allocation8 + $0x130] sm:$0xf]  ;;  %v2147_v33 = vld [vmem:[#allocation8 + $0x134] sm:$0xf0] }
  0x59   :  { %600 = vmatpush.bf16.msrb.mxu2 %v1435_v57  ;;  %v1720_v57 = vld [vmem:[#allocation8 + $0x78] sm:$0xf0]  ;;  %v1886_v37 = vld [vmem:[#allocation8 + $0x1c0] sm:$0xf]  ;;  %v2165_v38 = vld [vmem:[#allocation8 + $0x1c4] sm:$0xf0] }
  0x5a   :  { %613 = vmatpush.bf16.msrb.mxu3 %v1563_v61  ;;  %v1723_v61 = vor.u32 %v2122_v55, %v1720_v57  ;;  %v1887_v39 = vor.u32 %v2165_v38, %v1886_v37  ;;  %v1760_v40 = vld [vmem:[#allocation8 + $0xc8] sm:$0xf0]  ;;  %v1806_v42 = vld [vmem:[#allocation8 + $0x120] sm:$0xf]  ;;  %v2145_v43 = vld [vmem:[#allocation8 + $0x124] sm:$0xf0] }
  0x5b   :  { %575 = vmatpush.bf16.msrb.mxu0 %v1415_v4  ;;  %v2138_v4 = vld [vmem:[#allocation8 + $0xf4] sm:$0xf]  ;;  %v1807_v45 = vor.u32 %v2145_v43, %v1806_v42  ;;  %v1680_v46 = vld [vmem:[#allocation8 + $0x28] sm:$0xf0]  ;;  %v1878_v48 = vld [vmem:[#allocation8 + $0x1b0] sm:$0xf] }
  0x5c   :  { %588 = vmatpush.bf16.msrb.mxu1 %v1543_v7  ;;  %v1787_v7 = vor.u32 %v2138_v4, %v1784_v6  ;;  %v2163_v50 = vld [vmem:[#allocation8 + $0x1b4] sm:$0xf0]  ;;  %v1752_v54 = vld [vmem:[#allocation8 + $0xb8] sm:$0xf0]  ;;  %v1798_v55 = vld [vmem:[#allocation8 + $0x110] sm:$0xf] }
  0x5d   :  { %601 = vmatpush.bf16.msrb.mxu2 %v1419_v8  ;;  %v1830_v8 = vld [vmem:[#allocation8 + $0x150] sm:$0xf]  ;;  %v1879_v52 = vor.u32 %v2163_v50, %v1878_v48  ;;  %v2110_v59 = vld [vmem:[#allocation8 + $0x14] sm:$0xf]  ;;  %v2161_v63 = vld [vmem:[#allocation8 + $0x1a4] sm:$0xf0] }
  0x5e   :  { %614 = vmatpush.bf16.msrb.mxu3 %v1547_v9  ;;  %576 = vmatmul.bf16.vlgmr.msrb.gmra.mxu0 %v2469_v49  ;;  %v2151_v9 = vld [vmem:[#allocation8 + $0x154] sm:$0xf0]  ;;  %v2128_v0 = vld [vmem:[#allocation8 + $0xa4] sm:$0xf]  ;;  %v1790_v4 = vld [vmem:[#allocation8 + $0x100] sm:$0xf] }
  0x5f   :  { %1018 = vmatpush.bf16.msra.mxu0 %v1719_v10  ;;  %589 = vmatmul.bf16.vlgmr.msrb.gmra.mxu1 %v2471_v53  ;;  %v2118_v10 = vld [vmem:[#allocation8 + $0x54] sm:$0xf]  ;;  %v1831_v11 = vor.u32 %v2151_v9, %v1830_v8  ;;  %v2108_v6 = vld [vmem:[#allocation8 + $0x4] sm:$0xf]  ;;  %v1664_v8 = vld [vmem:[#allocation8 + $0x8] sm:$0xf0] }
  0x60   :  { %1031 = vmatpush.bf16.msra.mxu1 %v1783_v15  ;;  %602 = vmatmul.bf16.vlgmr.msrb.gmra.mxu2 %v2469_v49  ;;  %v2115_v49 = vld [vmem:[#allocation8 + $0x34] sm:$0xf0]  ;;  %v1707_v13 = vor.u32 %v2118_v10, %v1704_v12  ;;  %v2169_v15 = vld [vmem:[#allocation8 + $0x1e4] sm:$0xf0]  ;;  %v2154_v9 = vld [vmem:[#allocation8 + $0x174] sm:$0xf] }
  0x61   :  { %615 = vmatmul.bf16.vlgmr.msrb.gmra.mxu3 %v2471_v53  ;;  %1044 = vmatpush.bf16.msra.mxu2 %v1847_v18  ;;  %v1687_v53 = vor.u32 %v2115_v49, %v1686_v35  ;;  %v1903_v17 = vor.u32 %v2169_v15, %v1902_v14  ;;  %v1776_v18 = vld [vmem:[#allocation8 + $0xe8] sm:$0xf0]  ;;  %v1815_v35 = vor.u32 %v2147_v33, %v1814_v32  ;;  %v1688_v49 = vld [vmem:[#allocation8 + $0x38] sm:$0xf0]  ;;  %v2159_v14 = vld [vmem:[#allocation8 + $0x194] sm:$0xf0] }
  0x62   :  { %1057 = vmatpush.bf16.msra.mxu3 %v1911_v5  ;;  %v2141_v5 = vld [vmem:[#allocation8 + $0x104] sm:$0xf0]  ;;  %v1848_v10 = vld [vmem:[#allocation8 + $0x178] sm:$0xf0]  ;;  %v2126_v15 = vld [vmem:[#allocation8 + $0x94] sm:$0xf] }
  0x63   :  { %1019 = vmatpush.bf16.msra.mxu0 %v1711_v19  ;;  %v1779_v19 = vor.u32 %v2136_v16, %v1776_v18  ;;  %v1851_v12 = vor.u32 %v2154_v9, %v1848_v10  ;;  %v2152_v20 = vld [vmem:[#allocation8 + $0x164] sm:$0xf]  ;;  %v1840_v21 = vld [vmem:[#allocation8 + $0x168] sm:$0xf0]  ;;  %v2150_v33 = vld [vmem:[#allocation8 + $0x154] sm:$0xf] }
  0x64   :  { %1032 = vmatpush.bf16.msra.mxu1 %v1775_v24  ;;  %v1696_v24 = vld [vmem:[#allocation8 + $0x48] sm:$0xf0]  ;;  %v2146_v50 = vld [vmem:[#allocation8 + $0x134] sm:$0xf]  ;;  %v2160_v9 = vld [vmem:[#allocation8 + $0x1a4] sm:$0xf] }
  0x65   :  { %1045 = vmatpush.bf16.msra.mxu2 %v1839_v27  ;;  %v1699_v25 = vor.u32 %v2116_v22, %v1696_v24  ;;  %v2167_v27 = vld [vmem:[#allocation8 + $0x1d4] sm:$0xf0]  ;;  %v1854_v22 = vld [vmem:[#allocation8 + $0x180] sm:$0xf]  ;;  %v2157_v24 = vld [vmem:[#allocation8 + $0x184] sm:$0xf0] }
  0x66   :  { %1058 = vmatpush.bf16.msra.mxu3 %v1903_v17  ;;  %v1736_v17 = vld [vmem:[#allocation8 + $0x98] sm:$0xf0]  ;;  %v1904_v37 = vld [vmem:[#allocation8 + $0x1e8] sm:$0xf0] }
  0x67   :  { %1020 = vmatpush.bf16.msra.mxu0 %v1703_v28  ;;  %v1895_v28 = vor.u32 %v2167_v27, %v1894_v26  ;;  %v1739_v18 = vor.u32 %v2126_v15, %v1736_v17  ;;  %v1728_v26 = vld [vmem:[#allocation8 + $0x88] sm:$0xf0]  ;;  %v1855_v27 = vor.u32 %v2157_v24, %v1854_v22 }
  0x68   :  { %1033 = vmatpush.bf16.msra.mxu1 %v1767_v31  ;;  %v1771_v31 = vor.u32 %v2134_v29, %v1768_v30  ;;  %v2170_v29 = vld [vmem:[#allocation8 + $0x1f4] sm:$0xf]  ;;  %v1912_v30 = vld [vmem:[#allocation8 + $0x1f8] sm:$0xf0]  ;;  %v1856_v24 = vld [vmem:[#allocation8 + $0x188] sm:$0xf0] }
  0x69   :  { %1046 = vmatpush.bf16.msra.mxu2 %v1831_v11  ;;  %v1667_v11 = vor.u32 %v2108_v6, %v1664_v8  ;;  %v1915_v32 = vor.u32 %v2170_v29, %v1912_v30  ;;  %v1800_v8 = vld [vmem:[#allocation8 + $0x118] sm:$0xf0] }
  0x6a   :  { %1059 = vmatpush.bf16.msra.mxu3 %v1895_v28 }
  0x6b   :  { %1021 = vmatpush.bf16.msra.mxu0 %v1695_v34  ;;  %v2114_v34 = vld [vmem:[#allocation8 + $0x34] sm:$0xf] }
  0x6c   :  { %1034 = vmatpush.bf16.msra.mxu1 %v1759_v36  ;;  %v1691_v36 = vor.u32 %v2114_v34, %v1688_v49  ;;  %v1832_v34 = vld [vmem:[#allocation8 + $0x158] sm:$0xf0] }
  0x6d   :  { %1047 = vmatpush.bf16.msra.mxu2 %v1823_v23  ;;  %v1843_v23 = vor.u32 %v2152_v20, %v1840_v21  ;;  %v1864_v20 = vld [vmem:[#allocation8 + $0x198] sm:$0xf0] }
  0x6e   :  { %1060 = vmatpush.bf16.msra.mxu3 %v1887_v39 }
  0x6f   :  { %1022 = vmatpush.bf16.msra.mxu0 %v1687_v53  ;;  %v2132_v53 = vld [vmem:[#allocation8 + $0xc4] sm:$0xf] }
  0x70   :  { %1035 = vmatpush.bf16.msra.mxu1 %v1751_v41  ;;  %v1763_v41 = vor.u32 %v2132_v53, %v1760_v40  ;;  %v2148_v40 = vld [vmem:[#allocation8 + $0x144] sm:$0xf] }
  0x71   :  { %1048 = vmatpush.bf16.msra.mxu2 %v1815_v35  ;;  %v1835_v35 = vor.u32 %v2150_v33, %v1832_v34 }
  0x72   :  { %1061 = vmatpush.bf16.msra.mxu3 %v1879_v52 }
  0x73   :  { %1023 = vmatpush.bf16.msra.mxu0 %v1679_v44  ;;  %v2112_v44 = vld [vmem:[#allocation8 + $0x24] sm:$0xf] }
  0x74   :  { %1036 = vmatpush.bf16.msra.mxu1 %v1743_v47  ;;  %v1683_v47 = vor.u32 %v2112_v44, %v1680_v46  ;;  %v1896_v46 = vld [vmem:[#allocation8 + $0x1d8] sm:$0xf0] }
  0x75   :  { %1049 = vmatpush.bf16.msra.mxu2 %v1807_v45  ;;  %v2166_v45 = vld [vmem:[#allocation8 + $0x1d4] sm:$0xf] }
  0x76   :  { %v1899_v48 = vor.u32 %v2166_v45, %v1896_v46  ;;  %v1976_v45 = vld [vmem:[#allocation10 + $0x78] sm:$0xf0]  ;;  %v1966_v46 = vld [vmem:[#allocation10 + $0x60] sm:$0xf] }
  0x77   :  { %1024 = vmatpush.bf16.msra.mxu0 %v1671_v51  ;;  %v2130_v51 = vld [vmem:[#allocation8 + $0xb4] sm:$0xf] }
  0x78   :  { %1037 = vmatpush.bf16.msra.mxu1 %v1735_v56  ;;  %v2143_v56 = vld [vmem:[#allocation8 + $0x114] sm:$0xf0]  ;;  %v1755_v57 = vor.u32 %v2130_v51, %v1752_v54  ;;  %v1816_v51 = vld [vmem:[#allocation8 + $0x138] sm:$0xf0] }
  0x79   :  { %v1799_v58 = vor.u32 %v2143_v56, %v1798_v55  ;;  %v1819_v55 = vor.u32 %v2146_v50, %v1816_v51  ;;  %v2184_v50 = vld [vmem:[#allocation10 + $0x64] sm:$0xf]  ;;  %v1968_v51 = vld [vmem:[#allocation10 + $0x68] sm:$0xf0] }
  0x7b   :  { %1025 = vmatpush.bf16.msra.mxu0 %v1663_v60  ;;  %v1672_v60 = vld [vmem:[#allocation8 + $0x18] sm:$0xf0]  ;;  %1050 = vmatpush.bf16.msra.mxu2 %v1799_v58 }
  0x7c   :  { %1038 = vmatpush.bf16.msra.mxu1 %v1727_v62  ;;  %v1675_v62 = vor.u32 %v2110_v59, %v1672_v60  ;;  %v2164_v59 = vld [vmem:[#allocation8 + $0x1c4] sm:$0xf]  ;;  %v1888_v60 = vld [vmem:[#allocation8 + $0x1c8] sm:$0xf0] }
  0x7f   :  { %1070 = vmatpush.bf16.msrb.mxu0 %v1723_v61  ;;  %v1870_v61 = vld [vmem:[#allocation8 + $0x1a0] sm:$0xf] }
  0x80   :  { %1083 = vmatpush.bf16.msrb.mxu1 %v1787_v7  ;;  %v1871_v2 = vor.u32 %v2161_v63, %v1870_v61  ;;  %v1791_v7 = vor.u32 %v2141_v5, %v1790_v4  ;;  %v2162_v4 = vld [vmem:[#allocation8 + $0x1b4] sm:$0xf]  ;;  %v1880_v5 = vld [vmem:[#allocation8 + $0x1b8] sm:$0xf0] }
  0x81   :  { %v1883_v6 = vor.u32 %v2162_v4, %v1880_v5  ;;  %v2179_v4 = vld [vmem:[#allocation10 + $0x34] sm:$0xf0]  ;;  %v2038_v5 = vld [vmem:[#allocation10 + $0xf0] sm:$0xf] }
  0x82   :  { %1062 = vmatpush.bf16.msra.mxu3 %v1871_v2  ;;  %1051 = vmatpush.bf16.msra.mxu2 %v1791_v7  ;;  %v2142_v7 = vld [vmem:[#allocation8 + $0x114] sm:$0xf] }
  0x83   :  { %1071 = vmatpush.bf16.msrb.mxu0 %v1715_v1  ;;  %v1744_v1 = vld [vmem:[#allocation8 + $0xa8] sm:$0xf0] }
  0x84   :  { %1084 = vmatpush.bf16.msrb.mxu1 %v1779_v19  ;;  %v1747_v3 = vor.u32 %v2128_v0, %v1744_v1  ;;  %v2481_v19 = vld [vmem:[#allocation7] sm:$0xf]  ;;  %v2144_v0 = vld [vmem:[#allocation8 + $0x124] sm:$0xf]  ;;  %v1808_v1 = vld [vmem:[#allocation8 + $0x128] sm:$0xf0] }
  0x85   :  { %v189_v44 = vperm.slane %v2481_v19, 1  ;;  %v1811_v2 = vor.u32 %v2144_v0, %v1808_v1  ;;  %v1952_v0 = vld [vmem:[#allocation10 + $0x48] sm:$0xf0] }
  0x86   :  { %1096 = vmatpush.bf16.msrb.mxu2 %v1851_v12  ;;  %v1872_v12 = vld [vmem:[#allocation8 + $0x1a8] sm:$0xf0] }
  0x87   :  { %1072 = vmatpush.bf16.msrb.mxu0 %v1707_v13  ;;  %v1862_v13 = vld [vmem:[#allocation8 + $0x190] sm:$0xf] }
  0x88   :  { %1085 = vmatpush.bf16.msrb.mxu1 %v1771_v31  ;;  %v1863_v16 = vor.u32 %v2159_v14, %v1862_v13  ;;  %v188_v31 = vperm.slane %v2481_v19, 0  ;;  %v2140_v13 = vld [vmem:[#allocation8 + $0x104] sm:$0xf]  ;;  %v1792_v14 = vld [vmem:[#allocation8 + $0x108] sm:$0xf0] }
  0x89   :  { %v1795_v21 = vor.u32 %v2140_v13, %v1792_v14  ;;  %v2202_v13 = vld [vmem:[#allocation10 + $0xf4] sm:$0xf]  ;;  %v2040_v14 = vld [vmem:[#allocation10 + $0xf8] sm:$0xf0] }
  0x8a   :  { %1063 = vmatpush.bf16.msra.mxu3 %v1863_v16  ;;  %1097 = vmatpush.bf16.msrb.mxu2 %v1843_v23  ;;  %v1875_v16 = vor.u32 %v2160_v9, %v1872_v12  ;;  %v2156_v23 = vld [vmem:[#allocation8 + $0x184] sm:$0xf]  ;;  %v2178_v9 = vld [vmem:[#allocation10 + $0x34] sm:$0xf] }
  0x8b   :  { %1073 = vmatpush.bf16.msrb.mxu0 %v1699_v25  ;;  %v2124_v25 = vld [vmem:[#allocation8 + $0x84] sm:$0xf] }
  0x8c   :  { %1086 = vmatpush.bf16.msrb.mxu1 %v1763_v41  ;;  %v1731_v28 = vor.u32 %v2124_v25, %v1728_v26  ;;  %v1824_v41 = vld [vmem:[#allocation8 + $0x148] sm:$0xf0]  ;;  %v1859_v25 = vor.u32 %v2156_v23, %v1856_v24  ;;  %v190_v26 = vperm.slane %v2481_v19, 2 }
  0x8d   :  { %v1827_v43 = vor.u32 %v2148_v40, %v1824_v41  ;;  %v1936_v23 = vld [vmem:[#allocation10 + $0x28] sm:$0xf0] }
  0x8e   :  { %1064 = vmatpush.bf16.msra.mxu3 %v1855_v27  ;;  %1098 = vmatpush.bf16.msrb.mxu2 %v1835_v35 }
  0x8f   :  { %1074 = vmatpush.bf16.msrb.mxu0 %v1691_v36  ;;  %v2168_v36 = vld [vmem:[#allocation8 + $0x1e4] sm:$0xf] }
  0x90   :  { %1087 = vmatpush.bf16.msrb.mxu1 %v1755_v57  ;;  %v1907_v39 = vor.u32 %v2168_v36, %v1904_v37 }
  0x92   :  { %1109 = vmatpush.bf16.msrb.mxu3 %v1915_v32  ;;  %1099 = vmatpush.bf16.msrb.mxu2 %v1827_v43  ;;  %v2187_v43 = vld [vmem:[#allocation10 + $0x74] sm:$0xf0] }
  0x93   :  { %1075 = vmatpush.bf16.msrb.mxu0 %v1683_v47 }
  0x94   :  { %1088 = vmatpush.bf16.msrb.mxu1 %v1747_v3 }
  0x96   :  { %1110 = vmatpush.bf16.msrb.mxu3 %v1907_v39  ;;  %1100 = vmatpush.bf16.msrb.mxu2 %v1819_v55  ;;  %v1958_v55 = vld [vmem:[#allocation10 + $0x50] sm:$0xf] }
  0x97   :  { %1076 = vmatpush.bf16.msrb.mxu0 %v1675_v62  ;;  %v1891_v62 = vor.u32 %v2164_v59, %v1888_v60  ;;  %v1960_v59 = vld [vmem:[#allocation10 + $0x58] sm:$0xf0]  ;;  %v1950_v60 = vld [vmem:[#allocation10 + $0x40] sm:$0xf] }
  0x98   :  { %1089 = vmatpush.bf16.msrb.mxu1 %v1739_v18  ;;  %v2158_v18 = vld [vmem:[#allocation8 + $0x194] sm:$0xf] }
  0x99   :  { %v1867_v22 = vor.u32 %v2158_v18, %v1864_v20  ;;  %v2030_v18 = vld [vmem:[#allocation10 + $0xe0] sm:$0xf] }
  0x9a   :  { %1111 = vmatpush.bf16.msrb.mxu3 %v1899_v48  ;;  %1101 = vmatpush.bf16.msrb.mxu2 %v1811_v2 }
  0x9b   :  { %1077 = vmatpush.bf16.msrb.mxu0 %v1667_v11  ;;  %v1803_v11 = vor.u32 %v2142_v7, %v1800_v8  ;;  %v2203_v8 = vld [vmem:[#allocation10 + $0xf4] sm:$0xf0] }
  0x9c   :  { %1090 = vmatpush.bf16.msrb.mxu1 %v1731_v28 }
  0x9e   :  { %1112 = vmatpush.bf16.msrb.mxu3 %v1891_v62  ;;  %1102 = vmatpush.bf16.msrb.mxu2 %v1803_v11  ;;  %v2039_v11 = vor.u32 %v2203_v8, %v2038_v5  ;;  %v2191_v8 = vld [vmem:[#allocation10 + $0x94] sm:$0xf0] }
  0xa2   :  { %1113 = vmatpush.bf16.msrb.mxu3 %v1883_v6  ;;  %1103 = vmatpush.bf16.msrb.mxu2 %v1795_v21  ;;  %v2201_v21 = vld [vmem:[#allocation10 + $0xe4] sm:$0xf0] }
  0xa3   :  { %v2031_v24 = vor.u32 %v2201_v21, %v2030_v18  ;;  %v1984_v18 = vld [vmem:[#allocation10 + $0x88] sm:$0xf0] }
  0xa6   :  { %1114 = vmatpush.bf16.msrb.mxu3 %v1875_v16  ;;  %v1934_v16 = vld [vmem:[#allocation10 + $0x20] sm:$0xf] }
  0xaa   :  { %1115 = vmatpush.bf16.msrb.mxu3 %v1867_v22  ;;  %v2176_v22 = vld [vmem:[#allocation10 + $0x24] sm:$0xf] }
  0xae   :  { %1116 = vmatpush.bf16.msrb.mxu3 %v1859_v25  ;;  %v1939_v25 = vor.u32 %v2176_v22, %v1936_v23 }
  0xbb   :  { %v525_v49 = vpop.f32.mrf.mxu0 }
  0xbc   :  { %v526_v38 = vadd.f32 %v525_v49, %v188_v31  ;;  %v538_v53 = vpop.f32.mrf.mxu1  ;;  %v191_v31 = vperm.slane %v2481_v19, 3 }
  0xbe   :  { %v539_v42 = vadd.f32 %v538_v53, %v526_v38 }
  0xc0   :  { %v620_v47 = vmax.f32 %v539_v42, 0.0  ;;  %v1974_v42 = vld [vmem:[#allocation10 + $0x70] sm:$0xf] }
  0xc1   :  { %v1975_v19 = vor.u32 %v2187_v43, %v1974_v42  ;;  %v2173_v42 = vld [vmem:[#allocation10 + $0x4] sm:$0xf0]  ;;  %v2014_v43 = vld [vmem:[#allocation10 + $0xc0] sm:$0xf] }
  0xc2   :  { %v624_v52 = vpack.c.bf16 %v620_v47, %v620_v47  ;;  %v2185_v47 = vld [vmem:[#allocation10 + $0x64] sm:$0xf0] }
  0xc3   :  { %v551_v54 = vpop.f32.mrf.mxu2  ;;  %v527_v58 = vpop.f32.mrf.mxu0 }
  0xc4   :  { %v552_v56 = vadd.f32 %v551_v54, %v189_v44  ;;  %v564_v57 = vpop.f32.mrf.mxu3  ;;  %1026 = vmatmul.bf16.vlgmr.msra.gmra.mxu0 %v624_v52  ;;  %v540_v61 = vpop.f32.mrf.mxu1  ;;  %v2186_v44 = vld [vmem:[#allocation10 + $0x74] sm:$0xf]  ;;  %v1971_v54 = vor.u32 %v2184_v50, %v1968_v51  ;;  %v2196_v50 = vld [vmem:[#allocation10 + $0xc4] sm:$0xf]  ;;  %v2016_v51 = vld [vmem:[#allocation10 + $0xc8] sm:$0xf0] }
  0xc5   :  { %v1979_v48 = vor.u32 %v2186_v44, %v1976_v45  ;;  %1324 = vmatpush.bf16.msra.mxu0 %v1975_v19  ;;  %v2181_v61 = vld [vmem:[#allocation10 + $0x44] sm:$0xf0]  ;;  %v2172_v45 = vld [vmem:[#allocation10 + $0x4] sm:$0xf] }
  0xc6   :  { %v565_v63 = vadd.f32 %v564_v57, %v552_v56  ;;  %v2183_v56 = vld [vmem:[#allocation10 + $0x54] sm:$0xf0]  ;;  %v2182_v57 = vld [vmem:[#allocation10 + $0x54] sm:$0xf]  ;;  %v1951_v1 = vor.u32 %v2181_v61, %v1950_v60  ;;  %v2197_v19 = vld [vmem:[#allocation10 + $0xc4] sm:$0xf0] }
  0xc7   :  { %v1959_v58 = vor.u32 %v2183_v56, %v1958_v55  ;;  %v1963_v62 = vor.u32 %v2182_v57, %v1960_v59  ;;  %v2006_v56 = vld [vmem:[#allocation10 + $0xb0] sm:$0xf]  ;;  %v2195_v57 = vld [vmem:[#allocation10 + $0xb4] sm:$0xf0]  ;;  %v2008_v60 = vld [vmem:[#allocation10 + $0xb8] sm:$0xf0] }
  0xc8   :  { %v621_v3 = vmax.f32 %v565_v63, 0.0  ;;  %v2180_v63 = vld [vmem:[#allocation10 + $0x44] sm:$0xf]  ;;  %v2007_v59 = vor.u32 %v2195_v57, %v2006_v56 }
  0xc9   :  { %v1955_v2 = vor.u32 %v2180_v63, %v1952_v0  ;;  %v2193_v63 = vld [vmem:[#allocation10 + $0xa4] sm:$0xf0]  ;;  %v2192_v0 = vld [vmem:[#allocation10 + $0xa4] sm:$0xf] }
  0xca   :  { %v625_v10 = vpack.c.bf16 %v621_v3, %v621_v3  ;;  %v1942_v3 = vld [vmem:[#allocation10 + $0x30] sm:$0xf]  ;;  %v1379_v57 = vld [vmem:[#allocation11] sm:$0xff] }
  0xcb   :  { %v553_v15 = vpop.f32.mrf.mxu2  ;;  %v1943_v7 = vor.u32 %v2179_v4, %v1942_v3 }
  0xcc   :  { %1039 = vmatmul.bf16.vlgmr.msra.gmra.mxu1 %v625_v10  ;;  %v566_v17 = vpop.f32.mrf.mxu3  ;;  %v2043_v15 = vor.u32 %v2202_v13, %v2040_v14  ;;  %v692_v13 = vld [vmem:[%s2506_s4] sm:$0x3]  ;;  %v1982_v14 = vld [vmem:[#allocation10 + $0x80] sm:$0xf] }
  0xcd   :  { %1337 = vmatpush.bf16.msra.mxu1 %v2039_v11  ;;  %v2177_v17 = vld [vmem:[#allocation10 + $0x24] sm:$0xf0]  ;;  %v1992_v11 = vld [vmem:[#allocation10 + $0x98] sm:$0xf0]  ;;  %v694_v21 = vperm.slane %v692_v13, 0 }
  0xce   :  { %v1935_v20 = vor.u32 %v2177_v17, %v1934_v16  ;;  %v2188_v16 = vld [vmem:[#allocation10 + $0x84] sm:$0xf] }
  0xd1   :  { %1338 = vmatpush.bf16.msra.mxu1 %v2031_v24 }
  0xd4   :  { %1078 = vmatmul.bf16.vlgmr.msrb.gmra.mxu0 %v624_v52  ;;  %v1967_v52 = vor.u32 %v2185_v47, %v1966_v46  ;;  %v1920_v46 = vld [vmem:[#allocation10 + $0x8] sm:$0xf0]  ;;  %v2015_v47 = vor.u32 %v2197_v19, %v2014_v43 }
  0xd5   :  { %v1158_v19 = vld [vmem:[%s2508_s6] sm:$0x3]  ;;  %s1391_s6 = sshll.u32 %s2510_s8, 4  ;;  %s1392_s6 = int_to_ptr.hbm [resolvable:$true] %s1391_s6 }
  0xd6   :  { %1325 = vmatpush.bf16.msra.mxu0 %v1967_v52 }
  0xda   :  { %1326 = vmatpush.bf16.msra.mxu0 %v1959_v58  ;;  %v2194_v58 = vld [vmem:[#allocation10 + $0xb4] sm:$0xf] }
  0xdb   :  { %v577_v27 = vpop.f32.mrf.mxu0  ;;  %v2011_v61 = vor.u32 %v2194_v58, %v2008_v60 }
  0xdc   :  { %v578_v28 = vadd.f32 %v577_v27, %v190_v26  ;;  %v590_v29 = vpop.f32.mrf.mxu1  ;;  %1091 = vmatmul.bf16.vlgmr.msrb.gmra.mxu1 %v625_v10  ;;  %v1944_v10 = vld [vmem:[#allocation10 + $0x38] sm:$0xf0]  ;;  %v2200_v26 = vld [vmem:[#allocation10 + $0xe4] sm:$0xf]  ;;  %v2032_v27 = vld [vmem:[#allocation10 + $0xe8] sm:$0xf0] }
  0xdd   :  { %v1947_v12 = vor.u32 %v2178_v9, %v1944_v10  ;;  %v2190_v9 = vld [vmem:[#allocation10 + $0x94] sm:$0xf] }
  0xde   :  { %v591_v30 = vadd.f32 %v590_v29, %v578_v28  ;;  %1327 = vmatpush.bf16.msra.mxu0 %v1951_v1  ;;  %v2035_v29 = vor.u32 %v2200_v26, %v2032_v27 }
  0xe0   :  { %v622_v32 = vmax.f32 %v591_v30, 0.0 }
  0xe2   :  { %v626_v33 = vpack.c.bf16 %v622_v32, %v622_v32  ;;  %1328 = vmatpush.bf16.msra.mxu0 %v1943_v7  ;;  %v2175_v32 = vld [vmem:[#allocation10 + $0x14] sm:$0xf0]  ;;  %v1990_v7 = vld [vmem:[#allocation10 + $0x90] sm:$0xf] }
  0xe3   :  { %v603_v34 = vpop.f32.mrf.mxu2  ;;  %v579_v36 = vpop.f32.mrf.mxu0  ;;  %v1991_v10 = vor.u32 %v2191_v8, %v1990_v7 }
  0xe4   :  { %v604_v35 = vadd.f32 %v603_v34, %v191_v31  ;;  %v616_v49 = vpop.f32.mrf.mxu3  ;;  %v592_v37 = vpop.f32.mrf.mxu1  ;;  %1052 = vmatmul.bf16.vlgmr.msra.gmra.mxu2 %v626_v33  ;;  %v1926_v31 = vld [vmem:[#allocation10 + $0x10] sm:$0xf]  ;;  %v1928_v36 = vld [vmem:[#allocation10 + $0x18] sm:$0xf0] }
  0xe5   :  { %1350 = vmatpush.bf16.msra.mxu2 %v1979_v48  ;;  %v1927_v34 = vor.u32 %v2175_v32, %v1926_v31  ;;  %v1923_v48 = vor.u32 %v2172_v45, %v1920_v46  ;;  %v1161_v46 = vperm.slane %v1158_v19, 1 }
  0xe6   :  { %v617_v38 = vadd.f32 %v616_v49, %v604_v35  ;;  %1329 = vmatpush.bf16.msra.mxu0 %v1935_v20  ;;  %v2199_v35 = vld [vmem:[#allocation10 + $0xd4] sm:$0xf0]  ;;  %v2174_v49 = vld [vmem:[#allocation10 + $0x14] sm:$0xf]  ;;  %v1987_v20 = vor.u32 %v2188_v16, %v1984_v18 }
  0xe8   :  { %v623_v53 = vmax.f32 %v617_v38, 0.0  ;;  %v1931_v38 = vor.u32 %v2174_v49, %v1928_v36 }
  0xe9   :  { %1351 = vmatpush.bf16.msra.mxu2 %v1971_v54  ;;  %v2019_v54 = vor.u32 %v2196_v50, %v2016_v51 }
  0xea   :  { %v627_v39 = vpack.c.bf16 %v623_v53, %v623_v53  ;;  %v2198_v53 = vld [vmem:[#allocation10 + $0xd4] sm:$0xf]  ;;  %1330 = vmatpush.bf16.msra.mxu0 %v1927_v34 }
  0xeb   :  { %v605_v40 = vpop.f32.mrf.mxu2 }
  0xec   :  { %v618_v41 = vpop.f32.mrf.mxu3  ;;  %1065 = vmatmul.bf16.vlgmr.msra.gmra.mxu3 %v627_v39 }
  0xed   :  { %1352 = vmatpush.bf16.msra.mxu2 %v1963_v62  ;;  %1363 = vmatpush.bf16.msra.mxu3 %v2043_v15  ;;  %v1918_v41 = vld [vmem:[#allocation10] sm:$0xf]  ;;  %v2189_v15 = vld [vmem:[#allocation10 + $0x84] sm:$0xf0] }
  0xee   :  { %v1919_v44 = vor.u32 %v2173_v42, %v1918_v41  ;;  %v1998_v62 = vld [vmem:[#allocation10 + $0xa0] sm:$0xf]  ;;  %v1983_v17 = vor.u32 %v2189_v15, %v1982_v14 }
  0xef   :  { %v1999_v1 = vor.u32 %v2193_v63, %v1998_v62 }
  0xf0   :  { %1331 = vmatpush.bf16.msra.mxu0 %v1919_v44 }
  0xf1   :  { %1353 = vmatpush.bf16.msra.mxu2 %v1955_v2  ;;  %1364 = vmatpush.bf16.msra.mxu3 %v2035_v29  ;;  %v2000_v2 = vld [vmem:[#allocation10 + $0xa8] sm:$0xf0] }
  0xf2   :  { %v2003_v3 = vor.u32 %v2192_v0, %v2000_v2 }
  0xf4   :  { %1104 = vmatmul.bf16.vlgmr.msrb.gmra.mxu2 %v626_v33  ;;  %v2022_v33 = vld [vmem:[#allocation10 + $0xd0] sm:$0xf] }
  0xf5   :  { %1354 = vmatpush.bf16.msra.mxu2 %v1947_v12  ;;  %v2023_v37 = vor.u32 %v2199_v35, %v2022_v33  ;;  %v1995_v12 = vor.u32 %v2190_v9, %v1992_v11  ;;  %v695_v33 = vperm.slane %v692_v13, 1 }
  0xf7   :  { %1339 = vmatpush.bf16.msra.mxu1 %v2023_v37 }
  0xf9   :  { %1355 = vmatpush.bf16.msra.mxu2 %v1939_v25 }
  0xfb   :  { %1340 = vmatpush.bf16.msra.mxu1 %v2015_v47 }
  0xfc   :  { %1117 = vmatmul.bf16.vlgmr.msrb.gmra.mxu3 %v627_v39  ;;  %v2024_v39 = vld [vmem:[#allocation10 + $0xd8] sm:$0xf0] }
  0xfd   :  { %v2027_v40 = vor.u32 %v2198_v53, %v2024_v39  ;;  %1356 = vmatpush.bf16.msra.mxu2 %v1931_v38 }
  0xff   :  { %1365 = vmatpush.bf16.msra.mxu3 %v2027_v40  ;;  %1341 = vmatpush.bf16.msra.mxu1 %v2007_v59 }
 0x101   :  { %1357 = vmatpush.bf16.msra.mxu2 %v1923_v48 }
 0x103   :  { %1366 = vmatpush.bf16.msra.mxu3 %v2019_v54  ;;  %1342 = vmatpush.bf16.msra.mxu1 %v1999_v1 }
 0x107   :  { %1367 = vmatpush.bf16.msra.mxu3 %v2011_v61  ;;  %1343 = vmatpush.bf16.msra.mxu1 %v1991_v10 }
 0x10b   :  { %1368 = vmatpush.bf16.msra.mxu3 %v2003_v3  ;;  %1344 = vmatpush.bf16.msra.mxu1 %v1983_v17 }
 0x10f   :  { %1369 = vmatpush.bf16.msra.mxu3 %v1995_v12 }
 0x113   :  { %1370 = vmatpush.bf16.msra.mxu3 %v1987_v20 }
 0x141   :  { %v2487_v6 = vpop.f32.mrf.mxu0 }
 0x142   :  { %v1028_v23 = vadd.f32 %v2487_v6, %v694_v21 }
 0x149   :  { %v2489_v28 = vpop.f32.mrf.mxu1  ;;  %v1029_v30 = vpop.f32.mrf.mxu0 }
 0x14a   :  { %v1041_v25 = vadd.f32 %v2489_v28, %v1028_v23 }
 0x151   :  { %v1042_v52 = vpop.f32.mrf.mxu1  ;;  %v1079_v55 = vpop.f32.mrf.mxu0 }
 0x152   :  { %v1080_v49 = vadd.f32 %v1079_v55, %v695_v33  ;;  %v1160_v55 = vperm.slane %v1158_v19, 0 }
 0x159   :  { %v1092_v4 = vpop.f32.mrf.mxu1  ;;  %v1081_v5 = vpop.f32.mrf.mxu0 }
 0x15a   :  { %v1093_v36 = vadd.f32 %v1092_v4, %v1080_v49 }
 0x161   :  { %v1094_v22 = vpop.f32.mrf.mxu1 }
 0x167   :  { %v1053_v24 = vpop.f32.mrf.mxu2 }
 0x168   :  { %v1054_v26 = vadd.f32 %v1053_v24, %v1041_v25 }
 0x16f   :  { %v1066_v27 = vpop.f32.mrf.mxu3  ;;  %v1055_v30 = vpop.f32.mrf.mxu2 }
 0x170   :  { %v1067_v29 = vadd.f32 %v1066_v27, %v1054_v26 }
 0x172   :  { %v1122_v31 = vmax.f32 %v1067_v29, 0.0 }
 0x174   :  { %v1124_v32 = vpack.c.bf16 %v1122_v31, %v1122_v31 }
 0x176   :  { %1332 = vmatmul.bf16.vlgmr.msra.gmra.mxu0 %v1124_v32  ;;  %1358 = vmatmul.bf16.vlgmr.msra.gmra.mxu2 %v1124_v32 }
 0x177   :  { %v1068_v34 = vpop.f32.mrf.mxu3  ;;  %v1105_v35 = vpop.f32.mrf.mxu2 }
 0x178   :  { %v1106_v37 = vadd.f32 %v1105_v35, %v1093_v36 }
 0x17f   :  { %v1118_v38 = vpop.f32.mrf.mxu3  ;;  %v1107_v6 = vpop.f32.mrf.mxu2 }
 0x180   :  { %v1119_v53 = vadd.f32 %v1118_v38, %v1106_v37 }
 0x182   :  { %v1123_v39 = vmax.f32 %v1119_v53, 0.0 }
 0x184   :  { %v1125_v40 = vpack.c.bf16 %v1123_v39, %v1123_v39 }
 0x186   :  { %1345 = vmatmul.bf16.vlgmr.msra.gmra.mxu1 %v1125_v40  ;;  %1371 = vmatmul.bf16.vlgmr.msra.gmra.mxu3 %v1125_v40 }
 0x187   :  { %v1120_v28 = vpop.f32.mrf.mxu3 }
 0x1f3   :  { %v1333_v41 = vpop.f32.mrf.mxu0 }
 0x1f4   :  { %v1334_v58 = vadd.f32 %v1333_v41, %v1160_v55 }
 0x1f9   :  { %v1359_v42 = vpop.f32.mrf.mxu2 }
 0x1fa   :  { %v1360_v47 = vadd.f32 %v1359_v42, %v1161_v46 }
 0x1fb   :  { %v1335_v43 = vpop.f32.mrf.mxu0 }
 0x201   :  { %v1361_v44 = vpop.f32.mrf.mxu2 }
 0x203   :  { %v1346_v45 = vpop.f32.mrf.mxu1 }
 0x204   :  { %v1347_v60 = vadd.f32 %v1346_v45, %v1334_v58 }
 0x209   :  { %v1372_v48 = vpop.f32.mrf.mxu3 }
 0x20a   :  { %v1373_v50 = vadd.f32 %v1372_v48, %v1360_v47 }
 0x20b   :  { %v1348_v51 = vpop.f32.mrf.mxu1 }
 0x20c   :  { %v1376_v52 = vmul.f32 0.5, %v1373_v50 }
 0x20e   :  { %v1377_v54 = vmul.f32 1.442695, %v1376_v52 }
 0x210   :  { %2215 = vpow2.f32 %v1377_v54 }
 0x211   :  { %v1374_v56 = vpop.f32.mrf.mxu3 }
 0x216   :  { %v2216_v59 = vpop.eup %2215 }
 0x217   :  { %v1380_v61 = vmul.f32 %v2216_v59, %v1379_v57  ;;  %1383 = vst [vmem:[#allocation13 + $0x8] sm:$0xff] %v2216_v59 }
 0x219   :  { %v1381_v62 = vadd.f32 %v1380_v61, %v1347_v60 }
 0x21b   :  { %1382 = vst [vmem:[#allocation13] sm:$0xff] %v1381_v62 }
 0x21c   :  { %1394 = dma.vmem_to_hbm [thread:$0]  %s1390_s15, 256, %s1392_s6, [#allocation4]  }
 0x21d   :  { %2393 = dma.done.wait [#allocation4], 256  }
 0x21e   :  { %2394 = vsyncadd [#allocation4], 4294967040 }
 0x21f   :  { %1399 = vsyncpa [#allocation3], 1 }
 0x220   :  { %1400 = vsyncpa [#allocation6], 1 }
 0x221   :  { %1401 = vsyncpa [#allocation9], 1 }
 0x222   :  { %1402 = vsyncpa [#allocation12], 1 }
 0x223   :  { %1403 = vsyncpa [#allocation4], 1 }

</bundles_post_ra>
